<compile_context>
chip_gen: v5e
topology: v5e:2x2
jax: 0.10.0
libtpu: 0.0.40
codegen_flags: <defaults>
</compile_context>

<pallas_src>
import functools
import math

import jax
import jax.numpy as jnp
from jax import lax
from jax.experimental import pallas as pl
from jax.experimental.pallas import tpu as pltpu


_COMPUTE_DTYPE = jnp.bfloat16        # MXU operand dtype; accumulation stays f32


def _round_up(n, m):
    return ((n + m - 1) // m) * m


@functools.lru_cache(maxsize=None)
def _vmem_limit_bytes():
    """Generation-aware scoped-VMEM budget, with headroom below physical VMEM."""
    cap = None
    try:
        cap = getattr(pltpu.get_tpu_info(), "vmem_capacity_bytes", None)
    except Exception:
        cap = None
    if not cap:
        cap = 64 * 1024 * 1024                       # conservative (v7x physical)
    lim = min(cap - 16 * 1024 * 1024, 100 * 1024 * 1024)
    return int(max(lim, 32 * 1024 * 1024))


def _gelu_exact(x):
    # torch.nn.functional.gelu default is the exact erf-based GELU.
    return 0.5 * x * (1.0 + lax.erf(x * (1.0 / math.sqrt(2.0))))


def _const_spec(shape):
    # Blocks whose index_map is constant across the grid (weights / biases):
    # keep them resident in VMEM single-buffered instead of double-buffered.
    return pl.BlockSpec(shape, lambda *_: (0,) * len(shape),
                        pipeline_mode=pl.Buffered(buffer_count=1))


def _layernorm_f32(x_f32, g_ref, b_ref, eps):
    mean = jnp.mean(x_f32, axis=-1, keepdims=True)
    xc = x_f32 - mean
    var = jnp.mean(xc * xc, axis=-1, keepdims=True)
    y = xc * lax.rsqrt(var + eps)
    return y * g_ref[...].astype(jnp.float32) + b_ref[...].astype(jnp.float32)


# ----------------------------------------------------------------------------
# Standalone LayerNorm kernel (used only for the final encoder norm)
# ----------------------------------------------------------------------------
def _layernorm_kernel(x_ref, g_ref, b_ref, o_ref, *, eps):
    y = _layernorm_f32(x_ref[...].astype(jnp.float32), g_ref, b_ref, eps)
    o_ref[...] = y.astype(o_ref.dtype)


def layernorm_forward(x, gamma, beta, *, eps=1e-6, tile_m=512):
    B, S, H = x.shape
    N = B * S
    tm = min(tile_m, _round_up(N, 8))
    x2d = x.reshape(N, H)
    itemsize = jnp.dtype(x.dtype).itemsize
    cost = pl.CostEstimate(flops=int(8 * N * H), transcendentals=int(N),
                           bytes_accessed=int(2 * N * H * itemsize + 2 * H * 4))

    out = pl.pallas_call(
        functools.partial(_layernorm_kernel, eps=eps),
        out_shape=jax.ShapeDtypeStruct((N, H), x.dtype),
        grid_spec=pltpu.PrefetchScalarGridSpec(
            num_scalar_prefetch=0,
            grid=(pl.cdiv(N, tm),),
            in_specs=[
                pl.BlockSpec((tm, H), lambda i: (i, 0)),
                _const_spec((1, H)),
                _const_spec((1, H)),
            ],
            out_specs=pl.BlockSpec((tm, H), lambda i: (i, 0)),
        ),
        compiler_params=pltpu.CompilerParams(
            dimension_semantics=("parallel",),
            vmem_limit_bytes=_vmem_limit_bytes(),
        ),
        cost_estimate=cost,
    )(x2d, gamma.reshape(1, H), beta.reshape(1, H))
    return out.reshape(B, S, H)


# ----------------------------------------------------------------------------
# Fused LN2 + MLP + residual kernel: y = fc2(gelu(fc1(LN(x)))) + x
# ----------------------------------------------------------------------------
def _mlp_kernel(x_ref, g_ref, bt_ref, w1_ref, b1_ref, w2_ref, b2_ref, o_ref,
                *, eps, compute_dtype):
    xf = x_ref[...].astype(jnp.float32)                      # (TM, H)
    xn = _layernorm_f32(xf, g_ref, bt_ref, eps)              # LN2 fused in
    xn_c = xn.astype(compute_dtype)

    h = jnp.dot(xn_c, w1_ref[...], preferred_element_type=jnp.float32)
    h = h + b1_ref[...].astype(jnp.float32)
    h = _gelu_exact(h)
    # TODO(synk): dropout is identity (eval mode); training-mode dropout would
    # use pltpu.prng_seed / pltpu.prng_random_bits.
    o = jnp.dot(h.astype(compute_dtype), w2_ref[...],
                preferred_element_type=jnp.float32)
    o = o + b2_ref[...].astype(jnp.float32)
    o = o + xf                                               # fused residual
    o_ref[...] = o.astype(o_ref.dtype)


def mlp_forward(x, w1, b1, w2, b2, gamma, beta, *, eps=1e-6, tile_m=512,
                compute_dtype=_COMPUTE_DTYPE):
    """x:(B,S,H) w1:(H,M) b1:(M,) w2:(M,H) b2:(H,) gamma/beta:(H,) for LN2."""
    B, S, H = x.shape
    M = w1.shape[1]
    N = B * S
    tm = min(tile_m, _round_up(N, 8))
    x2d = x.reshape(N, H)

    w1c = w1.astype(compute_dtype)
    w2c = w2.astype(compute_dtype)

    itemsize = jnp.dtype(x.dtype).itemsize
    w_itemsize = jnp.dtype(compute_dtype).itemsize
    cost = pl.CostEstimate(
        flops=int(4 * N * H * M),
        transcendentals=int(N * M),
        bytes_accessed=int(2 * N * H * itemsize            # x read + out write
                           + 2 * H * M * w_itemsize        # fc1/fc2 weights
                           + (M + 3 * H) * 4),             # biases + LN affine
    )

    out = pl.pallas_call(
        functools.partial(_mlp_kernel, eps=eps, compute_dtype=compute_dtype),
        out_shape=jax.ShapeDtypeStruct((N, H), x.dtype),
        grid_spec=pltpu.PrefetchScalarGridSpec(
            num_scalar_prefetch=0,
            grid=(pl.cdiv(N, tm),),
            in_specs=[
                pl.BlockSpec((tm, H), lambda i: (i, 0)),   # x row tile
                _const_spec((1, H)),                       # LN2 gamma
                _const_spec((1, H)),                       # LN2 beta
                _const_spec((H, M)),                       # fc1 weight (resident)
                _const_spec((1, M)),                       # fc1 bias
                _const_spec((M, H)),                       # fc2 weight (resident)
                _const_spec((1, H)),                       # fc2 bias
            ],
            out_specs=pl.BlockSpec((tm, H), lambda i: (i, 0)),
        ),
        compiler_params=pltpu.CompilerParams(
            dimension_semantics=("parallel",),
            vmem_limit_bytes=_vmem_limit_bytes(),
        ),
        cost_estimate=cost,
    )(x2d, gamma.reshape(1, H), beta.reshape(1, H),
      w1c, b1.reshape(1, M), w2c, b2.reshape(1, H))
    return out.reshape(B, S, H)


# ----------------------------------------------------------------------------
# Fused LN1 + multi-head self-attention + residual kernel (per-batch grid)
# ----------------------------------------------------------------------------
def _attention_kernel(x_ref, g_ref, bt_ref, wqkv_ref, bqkv_ref, wo_ref, bo_ref,
                      o_ref, acc_ref, *, num_heads, head_dim, eps, compute_dtype):
    xf = x_ref[...].astype(jnp.float32)                      # (S, H)
    xn = _layernorm_f32(xf, g_ref, bt_ref, eps)              # LN1 fused in
    xn_c = xn.astype(compute_dtype)

    # Accumulator starts as residual + out-proj bias; each head adds its
    # (S, H)-wide contribution ctx_h @ Wo_h -> every store is lane-dense.
    acc_ref[...] = xf + bo_ref[...].astype(jnp.float32)

    scale = 1.0 / math.sqrt(head_dim)

    def head_body(h, carry):
        # One fused QKV projection per head: (S, H) @ (H, 3*hd).
        qkv = jnp.dot(xn_c, wqkv_ref[h], preferred_element_type=jnp.float32)
        qkv = qkv + bqkv_ref[h].astype(jnp.float32)
        q = qkv[:, :head_dim]
        k = qkv[:, head_dim:2 * head_dim]
        v = qkv[:, 2 * head_dim:]

        # scores = q @ k^T  (contract last dims, bf16 operands, f32 accumulate)
        s = lax.dot_general(q.astype(compute_dtype), k.astype(compute_dtype),
                            (((1,), (1,)), ((), ())),
                            preferred_element_type=jnp.float32) * scale
        s = s - jnp.max(s, axis=-1, keepdims=True)
        p = jnp.exp(s)
        p = p * pl.reciprocal(jnp.sum(p, axis=-1, keepdims=True))
        # TODO(synk): attention dropout is identity in eval mode.
        ctx = jnp.dot(p.astype(compute_dtype), v.astype(compute_dtype),
                      preferred_element_type=jnp.float32)    # (S, hd)
        acc_ref[...] += jnp.dot(ctx.astype(compute_dtype), wo_ref[h],
                                preferred_element_type=jnp.float32)
        return carry

    lax.fori_loop(0, num_heads, head_body, 0)

    # TODO(synk): proj dropout is identity in eval mode.
    o_ref[...] = acc_ref[...].astype(o_ref.dtype)


def attention_forward(x, wq, bq, wk, bk, wv, bv, wo, bo, gamma, beta, *,
                      num_heads, eps=1e-6, compute_dtype=_COMPUTE_DTYPE):
    B, S, H = x.shape
    head_dim = H // num_heads
    assert head_dim * num_heads == H

    # Pack per-head fused QKV weight (nh, H, 3*hd) and bias (nh, 1, 3*hd);
    # W_out reshaped head-major (nh, hd, H).  Weights cast to bf16 once here.
    def per_head(w):                                 # (H, H) -> (nh, H, hd)
        return w.reshape(H, num_heads, head_dim).transpose(1, 0, 2)

    wqkv = jnp.concatenate([per_head(wq), per_head(wk), per_head(wv)],
                           axis=-1).astype(compute_dtype)
    bqkv = jnp.concatenate([bq.reshape(num_heads, 1, head_dim),
                            bk.reshape(num_heads, 1, head_dim),
                            bv.reshape(num_heads, 1, head_dim)], axis=-1)
    wo_h = wo.reshape(num_heads, head_dim, H).astype(compute_dtype)

    itemsize = jnp.dtype(x.dtype).itemsize
    w_itemsize = jnp.dtype(compute_dtype).itemsize
    cost = pl.CostEstimate(
        flops=int(B * (8 * S * H * H + 4 * S * S * H)),
        transcendentals=int(B * num_heads * S * S),
        bytes_accessed=int(2 * B * S * H * itemsize + 4 * H * H * w_itemsize
                           + 4 * H * 4 + 2 * H * 4),
    )

    kern = functools.partial(_attention_kernel, num_heads=num_heads,
                             head_dim=head_dim, eps=eps,
                             compute_dtype=compute_dtype)
    row_spec = pl.BlockSpec((None, S, H), lambda b: (b, 0, 0))

    # TODO(synk): for v7x megacore with tiny B, add a query-tile grid axis with
    # K/V held in per-batch VMEM scratch to give both TensorCores work.
    out = pl.pallas_call(
        kern,
        out_shape=jax.ShapeDtypeStruct((B, S, H), x.dtype),
        grid_spec=pltpu.PrefetchScalarGridSpec(
            num_scalar_prefetch=0,
            grid=(B,),
            in_specs=[
                row_spec,                                   # raw hidden states
                _const_spec((1, H)),                        # LN1 gamma
                _const_spec((1, H)),                        # LN1 beta
                _const_spec((num_heads, H, 3 * head_dim)),  # fused QKV weight
                _const_spec((num_heads, 1, 3 * head_dim)),  # fused QKV bias
                _const_spec((num_heads, head_dim, H)),      # out-proj weight
                _const_spec((1, H)),                        # out-proj bias
            ],
            out_specs=pl.BlockSpec((None, S, H), lambda b: (b, 0, 0)),
            scratch_shapes=[pltpu.VMEM((S, H), jnp.float32)],
        ),
        compiler_params=pltpu.CompilerParams(
            dimension_semantics=("parallel",),
            vmem_limit_bytes=_vmem_limit_bytes(),
        ),
        cost_estimate=cost,
    )(x, gamma.reshape(1, H), beta.reshape(1, H), wqkv, bqkv, wo_h,
      bo.reshape(1, H))
    return out


# ----------------------------------------------------------------------------
# Block / Encoder wrappers
# ----------------------------------------------------------------------------
def block_forward(x, p, *, num_heads):
    # LN1 + attention + residual fused in one kernel.
    x = attention_forward(x, p["wq"], p["bq"], p["wk"], p["bk"],
                          p["wv"], p["bv"], p["wo"], p["bo"],
                          p["ln1_g"], p["ln1_b"], num_heads=num_heads)
    # LN2 + MLP + residual fused in one kernel.
    x = mlp_forward(x, p["w1"], p["b1"], p["w2"], p["b2"],
                    p["ln2_g"], p["ln2_b"])
    return x


def encoder_forward(x, params, *, num_heads):
    # TODO(synk): vis=True attention-probability outputs are not returned by
    # the fused attention kernel (vis=False path implemented).
    attn_weights = []
    for p in params["layers"]:
        x = block_forward(x, p, num_heads=num_heads)
    encoded = layernorm_forward(x, params["ln_g"], params["ln_b"])
    return encoded, attn_weights


# ----------------------------------------------------------------------------
# Parameter init (weights stored as (in, out) == PyTorch weight.T)
# ----------------------------------------------------------------------------
def init_encoder_params(key, num_layers, hidden_size, mlp_dim, num_heads,
                        dtype=jnp.float32):
    def xavier_uniform(k, fan_in, fan_out):
        limit = math.sqrt(6.0 / (fan_in + fan_out))
        return jax.random.uniform(k, (fan_in, fan_out), dtype=dtype,
                                  minval=-limit, maxval=limit)

    def torch_linear(k, fan_in, fan_out):
        kw, kb = jax.random.split(k)
        bound = 1.0 / math.sqrt(fan_in)
        w = jax.random.uniform(kw, (fan_in, fan_out), dtype=dtype,
                               minval=-bound, maxval=bound)
        b = jax.random.uniform(kb, (fan_out,), dtype=dtype,
                               minval=-bound, maxval=bound)
        return w, b

    layers = []
    for _ in range(num_layers):
        key, kq, kk, kv, ko, k1, k2, kb1, kb2 = jax.random.split(key, 9)
        wq, bq = torch_linear(kq, hidden_size, hidden_size)
        wk, bk = torch_linear(kk, hidden_size, hidden_size)
        wv, bv = torch_linear(kv, hidden_size, hidden_size)
        wo, bo = torch_linear(ko, hidden_size, hidden_size)
        w1 = xavier_uniform(k1, hidden_size, mlp_dim)
        w2 = xavier_uniform(k2, mlp_dim, hidden_size)
        b1 = 1e-6 * jax.random.normal(kb1, (mlp_dim,), dtype=dtype)
        b2 = 1e-6 * jax.random.normal(kb2, (hidden_size,), dtype=dtype)
        layers.append(dict(
            ln1_g=jnp.ones((hidden_size,), dtype),
            ln1_b=jnp.zeros((hidden_size,), dtype),
            wq=wq, bq=bq, wk=wk, bk=bk, wv=wv, bv=bv, wo=wo, bo=bo,
            ln2_g=jnp.ones((hidden_size,), dtype),
            ln2_b=jnp.zeros((hidden_size,), dtype),
            w1=w1, b1=b1, w2=w2, b2=b2,
        ))
    return dict(layers=layers,
                ln_g=jnp.ones((hidden_size,), dtype),
                ln_b=jnp.zeros((hidden_size,), dtype)), key


# ----------------------------------------------------------------------------
# Pure-JAX reference of Encoder.forward (eval mode, vis=False).
# Matmul operands are cast to the same compute dtype as the kernels so the
# comparison stays tight while the kernels run bf16 on the MXU.
# ----------------------------------------------------------------------------
def encoder_reference(x, params, *, num_heads, matmul_dtype=_COMPUTE_DTYPE):
    def mm(a, w):
        return jnp.dot(a.astype(matmul_dtype), w.astype(matmul_dtype),
                       preferred_element_type=jnp.float32)

    def ln(z, g, b, eps=1e-6):
        z = z.astype(jnp.float32)
        mu = jnp.mean(z, axis=-1, keepdims=True)
        var = jnp.mean((z - mu) ** 2, axis=-1, keepdims=True)
        return (z - mu) * lax.rsqrt(var + eps) * g + b

    B, S, H = x.shape
    hd = H // num_heads
    x = x.astype(jnp.float32)
    for p in params["layers"]:
        h = x
        xn = ln(x, p["ln1_g"], p["ln1_b"])
        q = (mm(xn, p["wq"]) + p["bq"]).reshape(B, S, num_heads, hd).transpose(0, 2, 1, 3)
        k = (mm(xn, p["wk"]) + p["bk"]).reshape(B, S, num_heads, hd).transpose(0, 2, 1, 3)
        v = (mm(xn, p["wv"]) + p["bv"]).reshape(B, S, num_heads, hd).transpose(0, 2, 1, 3)
        s = jnp.einsum("bhqd,bhkd->bhqk", q.astype(matmul_dtype),
                       k.astype(matmul_dtype),
                       preferred_element_type=jnp.float32) / math.sqrt(hd)
        pr = jax.nn.softmax(s, axis=-1)
        ctx = jnp.einsum("bhqk,bhkd->bhqd", pr.astype(matmul_dtype),
                         v.astype(matmul_dtype),
                         preferred_element_type=jnp.float32)
        ctx = ctx.transpose(0, 2, 1, 3).reshape(B, S, H)
        x = mm(ctx, p["wo"]) + p["bo"] + h
        h = x
        xn = ln(x, p["ln2_g"], p["ln2_b"])
        f = mm(xn, p["w1"]) + p["b1"]
        f = 0.5 * f * (1.0 + lax.erf(f / math.sqrt(2.0)))
        x = mm(f, p["w2"]) + p["b2"] + h
    return ln(x, params["ln_g"], params["ln_b"])


if __name__ == "__main__":
    # Small transformer shapes: batch=2, seq=8, hidden=32, mlp_dim=64,
    # num_heads=4, num_layers=2.
    B, S, H, M, NH, L = 2, 8, 32, 64, 4, 2

    key = jax.random.PRNGKey(0)
    params, key = init_encoder_params(key, L, H, M, NH)
    key, kx = jax.random.split(key)
    x = jax.random.normal(kx, (B, S, H), dtype=jnp.float32)

    encoded, attn_weights = encoder_forward(x, params, num_heads=NH)
    jax.block_until_ready(encoded)

    ref = encoder_reference(x, params, num_heads=NH)
    err = float(jnp.max(jnp.abs(encoded - ref)))
    assert jnp.allclose(encoded, ref, atol=2e-2, rtol=2e-2), \
        f"mismatch vs reference (max abs err {err})"

    print("KERNEL_OK")
</pallas_src>

<mosaic_0001>
module attributes {stable_mosaic.version = 11 : i64} {
  func.func @_attention_kernel(%arg0: i32, %arg1: memref<1x8x32xf32, #tpu.memory_space<vmem>>, %arg2: memref<1x32xf32, #tpu.memory_space<vmem>>, %arg3: memref<1x32xf32, #tpu.memory_space<vmem>>, %arg4: memref<4x32x24xbf16, #tpu.memory_space<vmem>>, %arg5: memref<4x1x24xf32, #tpu.memory_space<vmem>>, %arg6: memref<4x8x32xbf16, #tpu.memory_space<vmem>>, %arg7: memref<1x32xf32, #tpu.memory_space<vmem>>, %arg8: memref<1x8x32xf32, #tpu.memory_space<vmem>>, %arg9: memref<8x32xf32, #tpu.memory_space<vmem>>) attributes {dimension_semantics = [#tpu.dimension_semantics<parallel>], iteration_bounds = array<i64: 2>, scalar_prefetch = 0 : i64, scratch_operands = 1 : i64, tpu.core_type = #tpu.core_type<tc>, window_params = [{transform_indices = @transform_0, window_bounds = array<i64: 1, 8, 32>}, {pipeline_mode = #tpu.pipeline_mode<synchronous>, transform_indices = @transform_1, window_bounds = array<i64: 1, 32>}, {pipeline_mode = #tpu.pipeline_mode<synchronous>, transform_indices = @transform_2, window_bounds = array<i64: 1, 32>}, {pipeline_mode = #tpu.pipeline_mode<synchronous>, transform_indices = @transform_3, window_bounds = array<i64: 4, 32, 24>}, {pipeline_mode = #tpu.pipeline_mode<synchronous>, transform_indices = @transform_4, window_bounds = array<i64: 4, 1, 24>}, {pipeline_mode = #tpu.pipeline_mode<synchronous>, transform_indices = @transform_5, window_bounds = array<i64: 4, 8, 32>}, {pipeline_mode = #tpu.pipeline_mode<synchronous>, transform_indices = @transform_6, window_bounds = array<i64: 1, 32>}, {transform_indices = @transform_7, window_bounds = array<i64: 1, 8, 32>}]} {
    %c0 = arith.constant 0 : index
    %c0_0 = arith.constant 0 : index
    %c0_1 = arith.constant 0 : index
    %0 = vector.load %arg1[%c0, %c0_0, %c0_1] : memref<1x8x32xf32, #tpu.memory_space<vmem>>, vector<1x8x32xf32>
    %1 = vector.shape_cast %0 : vector<1x8x32xf32> to vector<8x32xf32>
    %cst = arith.constant dense<0.000000e+00> : vector<8xf32>
    %2 = vector.multi_reduction <add>, %1, %cst [1] : vector<8x32xf32> to vector<8xf32>
    %3 = vector.shape_cast %2 : vector<8xf32> to vector<8x1xf32>
    %cst_2 = arith.constant 3.200000e+01 : f32
    %4 = vector.broadcast %cst_2 : f32 to vector<8x1xf32>
    %5 = arith.divf %3, %4 : vector<8x1xf32>
    %6 = vector.broadcast %5 : vector<8x1xf32> to vector<8x32xf32>
    %7 = arith.subf %1, %6 : vector<8x32xf32>
    %8 = arith.mulf %7, %7 : vector<8x32xf32>
    %cst_3 = arith.constant dense<0.000000e+00> : vector<8xf32>
    %9 = vector.multi_reduction <add>, %8, %cst_3 [1] : vector<8x32xf32> to vector<8xf32>
    %10 = vector.shape_cast %9 : vector<8xf32> to vector<8x1xf32>
    %cst_4 = arith.constant 3.200000e+01 : f32
    %11 = vector.broadcast %cst_4 : f32 to vector<8x1xf32>
    %12 = arith.divf %10, %11 : vector<8x1xf32>
    %cst_5 = arith.constant 9.99999997E-7 : f32
    %13 = vector.broadcast %cst_5 : f32 to vector<8x1xf32>
    %14 = arith.addf %12, %13 : vector<8x1xf32>
    %15 = math.rsqrt %14 : vector<8x1xf32>
    %16 = vector.broadcast %15 : vector<8x1xf32> to vector<8x32xf32>
    %17 = arith.mulf %7, %16 : vector<8x32xf32>
    %c0_6 = arith.constant 0 : index
    %c0_7 = arith.constant 0 : index
    %18 = vector.load %arg2[%c0_6, %c0_7] : memref<1x32xf32, #tpu.memory_space<vmem>>, vector<1x32xf32>
    %19 = vector.broadcast %18 : vector<1x32xf32> to vector<8x32xf32>
    %20 = arith.mulf %17, %19 : vector<8x32xf32>
    %c0_8 = arith.constant 0 : index
    %c0_9 = arith.constant 0 : index
    %21 = vector.load %arg3[%c0_8, %c0_9] : memref<1x32xf32, #tpu.memory_space<vmem>>, vector<1x32xf32>
    %22 = vector.broadcast %21 : vector<1x32xf32> to vector<8x32xf32>
    %23 = arith.addf %20, %22 : vector<8x32xf32>
    %24 = arith.truncf %23 : vector<8x32xf32> to vector<8x32xbf16>
    %c0_10 = arith.constant 0 : index
    %c0_11 = arith.constant 0 : index
    %25 = vector.load %arg7[%c0_10, %c0_11] : memref<1x32xf32, #tpu.memory_space<vmem>>, vector<1x32xf32>
    %26 = vector.broadcast %25 : vector<1x32xf32> to vector<8x32xf32>
    %27 = arith.addf %1, %26 : vector<8x32xf32>
    %c0_12 = arith.constant 0 : index
    %c0_13 = arith.constant 0 : index
    %28 = vector.load %arg9[%c0_12, %c0_13] : memref<8x32xf32, #tpu.memory_space<vmem>>, vector<8x32xf32>
    tpu.vector_store %arg9[%c0_12, %c0_13], %27 {strides = array<i32>} : memref<8x32xf32, #tpu.memory_space<vmem>>, vector<8x32xf32>,
    %c0_i32 = arith.constant 0 : i32
    %c4_i32 = arith.constant 4 : i32
    %29 = arith.addi %c0_i32, %c4_i32 : i32
    %c1_i32 = arith.constant 1 : i32
    scf.for %arg10 = %c0_i32 to %29 step %c1_i32  : i32 {
      %34 = arith.index_cast %arg10 : i32 to index
      %c0_20 = arith.constant 0 : index
      %c0_21 = arith.constant 0 : index
      %35 = vector.load %arg4[%34, %c0_20, %c0_21] : memref<4x32x24xbf16, #tpu.memory_space<vmem>>, vector<1x32x24xbf16>
      %36 = vector.shape_cast %35 : vector<1x32x24xbf16> to vector<32x24xbf16>
      %cst_22 = arith.constant dense<0.000000e+00> : vector<8x24xf32>
      %37 = tpu.matmul %24, %36, %cst_22 {dimension_numbers = #tpu.dot_dimension_numbers<[1], [0], [0], [1], [0, 0, 1, 1], [], []>} : vector<8x32xbf16>, vector<32x24xbf16>, vector<8x24xf32> -> vector<8x24xf32>
      %38 = arith.index_cast %arg10 : i32 to index
      %c0_23 = arith.constant 0 : index
      %c0_24 = arith.constant 0 : index
      %39 = vector.load %arg5[%38, %c0_23, %c0_24] : memref<4x1x24xf32, #tpu.memory_space<vmem>>, vector<1x1x24xf32>
      %40 = vector.shape_cast %39 : vector<1x1x24xf32> to vector<1x24xf32>
      %41 = vector.broadcast %40 : vector<1x24xf32> to vector<8x24xf32>
      %42 = arith.addf %37, %41 : vector<8x24xf32>
      %43 = vector.extract_strided_slice %42 {offsets = [0, 0], sizes = [8, 8], strides = [1, 1]} : vector<8x24xf32> to vector<8x8xf32>
      %44 = vector.extract_strided_slice %42 {offsets = [0, 8], sizes = [8, 8], strides = [1, 1]} : vector<8x24xf32> to vector<8x8xf32>
      %45 = vector.extract_strided_slice %42 {offsets = [0, 16], sizes = [8, 8], strides = [1, 1]} : vector<8x24xf32> to vector<8x8xf32>
      %46 = arith.truncf %43 : vector<8x8xf32> to vector<8x8xbf16>
      %47 = arith.truncf %44 : vector<8x8xf32> to vector<8x8xbf16>
      %cst_25 = arith.constant dense<0.000000e+00> : vector<8x8xf32>
      %48 = tpu.matmul %46, %47, %cst_25 {dimension_numbers = #tpu.dot_dimension_numbers<[1], [1], [0], [0], [0, 0, 1, 0], [], []>} : vector<8x8xbf16>, vector<8x8xbf16>, vector<8x8xf32> -> vector<8x8xf32>
      %cst_26 = arith.constant 0.353553385 : f32
      %49 = vector.broadcast %cst_26 : f32 to vector<8x8xf32>
      %50 = arith.mulf %48, %49 : vector<8x8xf32>
      %cst_27 = arith.constant dense<0xFF800000> : vector<8xf32>
      %51 = vector.multi_reduction <maximumf>, %50, %cst_27 [1] : vector<8x8xf32> to vector<8xf32>
      %52 = vector.shape_cast %51 : vector<8xf32> to vector<8x1xf32>
      %53 = vector.broadcast %52 : vector<8x1xf32> to vector<8x8xf32>
      %54 = arith.subf %50, %53 : vector<8x8xf32>
      %55 = math.exp %54 : vector<8x8xf32>
      %cst_28 = arith.constant dense<0.000000e+00> : vector<8xf32>
      %56 = vector.multi_reduction <add>, %55, %cst_28 [1] : vector<8x8xf32> to vector<8xf32>
      %57 = vector.shape_cast %56 : vector<8xf32> to vector<8x1xf32>
      %58 = tpu.reciprocal %57 : vector<8x1xf32> -> vector<8x1xf32>
      %59 = vector.broadcast %58 : vector<8x1xf32> to vector<8x8xf32>
      %60 = arith.mulf %55, %59 : vector<8x8xf32>
      %61 = arith.truncf %60 : vector<8x8xf32> to vector<8x8xbf16>
      %62 = arith.truncf %45 : vector<8x8xf32> to vector<8x8xbf16>
      %cst_29 = arith.constant dense<0.000000e+00> : vector<8x8xf32>
      %63 = tpu.matmul %61, %62, %cst_29 {dimension_numbers = #tpu.dot_dimension_numbers<[1], [0], [0], [1], [0, 0, 1, 1], [], []>} : vector<8x8xbf16>, vector<8x8xbf16>, vector<8x8xf32> -> vector<8x8xf32>
      %c0_30 = arith.constant 0 : index
      %c0_31 = arith.constant 0 : index
      %64 = vector.load %arg9[%c0_30, %c0_31] : memref<8x32xf32, #tpu.memory_space<vmem>>, vector<8x32xf32>
      %65 = arith.truncf %63 : vector<8x8xf32> to vector<8x8xbf16>
      %66 = arith.index_cast %arg10 : i32 to index
      %c0_32 = arith.constant 0 : index
      %c0_33 = arith.constant 0 : index
      %67 = vector.load %arg6[%66, %c0_32, %c0_33] : memref<4x8x32xbf16, #tpu.memory_space<vmem>>, vector<1x8x32xbf16>
      %68 = vector.shape_cast %67 : vector<1x8x32xbf16> to vector<8x32xbf16>
      %cst_34 = arith.constant dense<0.000000e+00> : vector<8x32xf32>
      %69 = tpu.matmul %65, %68, %cst_34 {dimension_numbers = #tpu.dot_dimension_numbers<[1], [0], [0], [1], [0, 0, 1, 1], [], []>} : vector<8x8xbf16>, vector<8x32xbf16>, vector<8x32xf32> -> vector<8x32xf32>
      %70 = arith.addf %64, %69 : vector<8x32xf32>
      %c0_35 = arith.constant 0 : index
      %c0_36 = arith.constant 0 : index
      %71 = vector.load %arg9[%c0_35, %c0_36] : memref<8x32xf32, #tpu.memory_space<vmem>>, vector<8x32xf32>
      tpu.vector_store %arg9[%c0_35, %c0_36], %70 {strides = array<i32>} : memref<8x32xf32, #tpu.memory_space<vmem>>, vector<8x32xf32>,
    }
    %c4_i32_14 = arith.constant 4 : i32
    %c0_15 = arith.constant 0 : index
    %c0_16 = arith.constant 0 : index
    %30 = vector.load %arg9[%c0_15, %c0_16] : memref<8x32xf32, #tpu.memory_space<vmem>>, vector<8x32xf32>
    %c0_17 = arith.constant 0 : index
    %c0_18 = arith.constant 0 : index
    %c0_19 = arith.constant 0 : index
    %31 = vector.load %arg8[%c0_17, %c0_18, %c0_19] : memref<1x8x32xf32, #tpu.memory_space<vmem>>, vector<1x8x32xf32>
    %32 = vector.shape_cast %31 : vector<1x8x32xf32> to vector<8x32xf32>
    %33 = vector.shape_cast %30 : vector<8x32xf32> to vector<1x8x32xf32>
    tpu.vector_store %arg8[%c0_17, %c0_18, %c0_19], %33 {strides = array<i32>} : memref<1x8x32xf32, #tpu.memory_space<vmem>>, vector<1x8x32xf32>,
    return
  }
  func.func @transform_0(%arg0: i32) -> (i32, i32, i32) {
    %c0_i32 = arith.constant 0 : i32
    %c0_i32_0 = arith.constant 0 : i32
    %c0_i32_1 = arith.constant 0 : i32
    return %arg0, %c0_i32, %c0_i32_0 : i32, i32, i32
  }
  func.func @transform_1(%arg0: i32) -> (i32, i32) {
    %c0_i32 = arith.constant 0 : i32
    %c0_i32_0 = arith.constant 0 : i32
    %c0_i32_1 = arith.constant 0 : i32
    return %c0_i32, %c0_i32_0 : i32, i32
  }
  func.func @transform_2(%arg0: i32) -> (i32, i32) {
    %c0_i32 = arith.constant 0 : i32
    %c0_i32_0 = arith.constant 0 : i32
    %c0_i32_1 = arith.constant 0 : i32
    return %c0_i32, %c0_i32_0 : i32, i32
  }
  func.func @transform_3(%arg0: i32) -> (i32, i32, i32) {
    %c0_i32 = arith.constant 0 : i32
    %c0_i32_0 = arith.constant 0 : i32
    %c0_i32_1 = arith.constant 0 : i32
    %c0_i32_2 = arith.constant 0 : i32
    return %c0_i32, %c0_i32_0, %c0_i32_1 : i32, i32, i32
  }
  func.func @transform_4(%arg0: i32) -> (i32, i32, i32) {
    %c0_i32 = arith.constant 0 : i32
    %c0_i32_0 = arith.constant 0 : i32
    %c0_i32_1 = arith.constant 0 : i32
    %c0_i32_2 = arith.constant 0 : i32
    return %c0_i32, %c0_i32_0, %c0_i32_1 : i32, i32, i32
  }
  func.func @transform_5(%arg0: i32) -> (i32, i32, i32) {
    %c0_i32 = arith.constant 0 : i32
    %c0_i32_0 = arith.constant 0 : i32
    %c0_i32_1 = arith.constant 0 : i32
    %c0_i32_2 = arith.constant 0 : i32
    return %c0_i32, %c0_i32_0, %c0_i32_1 : i32, i32, i32
  }
  func.func @transform_6(%arg0: i32) -> (i32, i32) {
    %c0_i32 = arith.constant 0 : i32
    %c0_i32_0 = arith.constant 0 : i32
    %c0_i32_1 = arith.constant 0 : i32
    return %c0_i32, %c0_i32_0 : i32, i32
  }
  func.func @transform_7(%arg0: i32) -> (i32, i32, i32) {
    %c0_i32 = arith.constant 0 : i32
    %c0_i32_0 = arith.constant 0 : i32
    %c0_i32_1 = arith.constant 0 : i32
    return %arg0, %c0_i32, %c0_i32_0 : i32, i32, i32
  }
}

</mosaic_0001>

<bundles_post_ra>
// kernel: tpu_custom_call.1
= control target key start
LH: loop header
LB: loop body
LE: loop exit
PB: predicated region body
PF: predicated region fallthrough
CT: control target
= control target key end

     0   :  { %12 = vsyncpa [#allocation4], 0  ;;  %s903_s0 = inlined_call_operand.vmem [shape: f32[2,8,32], index: 0, kind: input, shape index: {}]   ;;  %s904_s1 = inlined_call_operand.vmem [shape: f32[1,32], index: 1, kind: input, shape index: {}]   ;;  %s905_s2 = inlined_call_operand.vmem [shape: f32[1,32], index: 2, kind: input, shape index: {}]   ;;  %s906_s3 = inlined_call_operand.vmem [shape: bf16[4,32,24], index: 3, kind: input, shape index: {}]   ;;  %s907_s4 = inlined_call_operand.vmem [shape: f32[4,1,24], index: 4, kind: input, shape index: {}]   ;;  %s908_s5 = inlined_call_operand.vmem [shape: bf16[4,8,32], index: 5, kind: input, shape index: {}]   ;;  %s909_s6 = inlined_call_operand.vmem [shape: f32[1,32], index: 6, kind: input, shape index: {}]   ;;  %s910_s7 = inlined_call_operand.hbm [shape: f32[2,8,32], index: 7, kind: output, shape index: {}]  }
   0x1   :  { %14 = vsyncpa [#allocation4 + $0x1], 0  ;;  %s759_s24 = smov 0   ;;  %s761_s25 = smov 0  }
   0x2   :  { %s763_s26 = smov 0   ;;  %s765_s27 = smov 0  }
   0x3 LB: > { %s780_s28 = sadd.s32 4294967295, %s710_s27   ;;  %s554_s29 = sadd.s32 4294967294, %s710_s27   ;;  %s710_s27 = sphi %s765_s27, %s916_s27   ;;  %s706_s26 = sphi %s763_s26, %s915_s26   ;;  %s702_s25 = sphi %s761_s25, %s914_s25   ;;  %s698_s24 = sphi %s759_s24, %s913_s24  }
   0x4   : > { %s784_s30 = sadd.s32 1, %s710_s27   ;;  %s179_s8 = sadd.s32 1, %s706_s26 }
   0x5   : > { %s176_s9 = ssub.s32 %s710_s27, %s784_s30  ;;  %p189_p0 = scmp.ne.s32.totalorder %s706_s26, %s702_s25 }
   0x6   : > { %p177_p1 = scmp.eq.s32.totalorder %s176_s9, 0  ;;  %p190_p2 = scmp.eq.s32.totalorder %s780_s28, 1 }
   0x7   : > { %p195_p3 = scmp.ne.s32.totalorder %s702_s25, %s698_s24  ;;  %p196_p4 = scmp.eq.s32.totalorder %s554_s29, 1 }
   0x8   : > { %s795_s10 = scalar_select %p177_p1, %s706_s26, %s179_s8  }
   0x9   : > { %p797_p5 = por %p190_p2, %p189_p0  ;;  %p801_p6 = por %p196_p4, %p195_p3 }
   0xa   : > { %p557_p7 = scmp.ge.s32.totalorder %s710_s27, 1  ;;  %p239_p8 = scmp.lt.s32.totalorder %s710_s27, 3 }
   0xc   : > { %p240_p9 = pnand %p557_p7, %p239_p8 }
   0xd   : > { %p270_p10 = scmp.lt.s32.totalorder (!%p240_p9), %s780_s28, 1  ;;  %s267_s20 = sand.u32 (!%p240_p9), 1, %s702_s25  }
   0xe   : > { %243 = sbr.rel (%p240_p9) target bundleno = 1237 (0x4d5), region = 48  ;;  %s821_s21 = sshll.u32 (!%p240_p9), %s267_s20, 3 }
   0xf   : > { %s269_s9 = scalar_lea.vmem (!%p240_p9), [#allocation3], %s821_s21 }
  0x13   : > { %s271_s13 = scalar_select %p270_p10, %s780_s28, 1  ;;  %v632_v0 = vld [vmem:[%s909_s6] ss:$0 sm:$0xff]  ;;  %vm276_vm0 = vcmask 261120   ;;  %v716_v4 = vmov 32.0  }
  0x14   : > { %635 = vrcp.f32 %v716_v4  ;;  %v633_v25 = vld [vmem:[%s904_s1] ss:$0 sm:$0xff] }
  0x15   : > { %s559_s16 = sshll.u32 %s271_s13, 3  ;;  %v634_v27 = vld [vmem:[%s905_s2] ss:$0 sm:$0xff]  ;;  %s834_s13 = smov 0  }
  0x16   : > { %s273_s19 = scalar_lea.vmem %s903_s0, %s559_s16 }
  0x17   : > { %v275_v1 = vld [vmem:[%s273_s19] sm:$0xff] }
  0x18   : > { %v277_v2 = vsel %vm276_vm0, %v275_v1, 0.0  ;;  %v321_v3 = vadd.f32 %v632_v0, %v275_v1 }
  0x19   : > { %278 = vadd.xlane.f32.xlu0 %v277_v2 }
  0x1a   : > { %322 = vst.msk [vmem:[#allocation2] sm:$0xff] %vm276_vm0, %v321_v3  ;;  %v636_v5 = vpop.eup %635 }
  0x1b   : > { %v281_v6 = vmul.f32 32.0, %v636_v5  ;;  %vm285_vm1 = vweird.f32 %v636_v5 }
  0x1d   : > { %v282_v7 = vsub.f32 1.0, %v281_v6 }
  0x1f   : > { %v283_v8 = vmul.f32 %v636_v5, %v282_v7 }
  0x21   : > { %v284_v9 = vadd.f32 %v636_v5, %v283_v8 }
  0x23   : > { %v286_v10 = vsel %vm285_vm1, %v636_v5, %v284_v9 }
  0x8c   : > { %v279_v11 = vpop.xlane.xlu0 %278 }
  0x8d   : > { %v287_v12 = vmul.f32 %v286_v10, %v279_v11 }
  0x8f   : > { %v288_v13 = vsub.f32 %v275_v1, %v287_v12 }
  0x91   : > { %v289_v14 = vmul.f32 %v288_v13, %v288_v13 }
  0x93   : > { %v290_v15 = vsel %vm276_vm0, %v289_v14, 0.0 }
  0x94   : > { %291 = vadd.xlane.f32.xlu0 %v290_v15 }
 0x107   : > { %v292_v16 = vpop.xlane.xlu0 %291 }
 0x108   : > { %v293_v17 = vmul.f32 %v292_v16, %v286_v10 }
 0x10a   : > { %v294_v18 = vadd.f32 1e-06, %v293_v17 }
 0x10c   : > { %637 = vrsqrt.f32 %v294_v18  ;;  %vm301_vm3 = vweird.f32 %v294_v18 }
 0x112   : > { %v638_v19 = vpop.eup %637 }
 0x113   : > { %v296_v20 = vmul.f32 %v638_v19, %v294_v18  ;;  %vm302_vm2 = vweird.f32 %v638_v19 }
 0x114   : > { %vm303_vm4 = vmor %vm301_vm3, %vm302_vm2 }
 0x115   : > { %v297_v21 = vmul.f32 %v638_v19, %v296_v20 }
 0x117   : > { %v298_v22 = vmul.f32 0.5, %v297_v21 }
 0x119   : > { %v299_v23 = vsub.f32 1.5, %v298_v22 }
 0x11b   : > { %v300_v24 = vmul.f32 %v638_v19, %v299_v23 }
 0x11d   : > { %v304_v26 = vsel %vm303_vm4, %v638_v19, %v300_v24 }
 0x11e   : > { %v305_v28 = vmul.f32 %v304_v26, %v288_v13 }
 0x120   : > { %v310_v29 = vmul.f32 %v633_v25, %v305_v28 }
 0x122   : > { %v829_v30 = vadd.f32 %v634_v27, %v310_v29 }
 0x124   : > { %v316_v31 = vpack.c.bf16 %v829_v30, %v829_v30 }
 0x125 LB: >> { %s579_s14 = sshll.u32 %s714_s13, 4  ;;  %s336_s17 = scalar_lea.vmem %s907_s4, %s714_s13  ;;  %vm373_vm5 = vcmask 64512   ;;  %vm424_vm10 = vcmask 1043456   ;;  %v441_v6 = vld [vmem:[#allocation2] sm:$0xff]  ;;  %s714_s13 = sphi %s834_s13, %s328_s13  }
 0x126   : >> { %s331_s22 = scalar_lea.vmem %s906_s3, %s579_s14  ;;  %v639_v34 = vld [vmem:[%s336_s17] ss:$0 sm:$0xff]  ;;  %s717_s23 = smov 120  }
 0x127   : >> { %v581_v32 = vld [vmem:[%s331_s22 + $0x8] sm:$0xff]  ;;  %v580_v33 = vld [vmem:[%s331_s22] sm:$0xff]  ;;  %s718_s29 = smov 112   ;;  %s573_s8 = sshll.u32 %s714_s13, 2 }
 0x128   : >> { %362 = vmatpush.bf16.msra.mxu0 %v581_v32  ;;  %s444_s16 = scalar_lea.vmem %s908_s5, %s573_s8  ;;  %s328_s13 = sadd.s32 1, %s714_s13  }
 0x129   : >> { %v445_v1 = vld [vmem:[%s444_s16] sm:$0xf]  ;;  %p325_p11 = scmp.ge.s32.totalorder %s328_s13, 4  }
 0x12a   : >> { %v450_v2 = vsel %vm424_vm10, %v445_v1, 0  ;;  %s576_s17 = sshll.u32 (%p325_p11), %s780_s28, 3  ;;  %s470_s13 = scalar_lea.sflag (%p325_p11), [#allocation4], %s267_s20 }
 0x12b   : >> { %459 = vmatpush.bf16.msra.mxu3 %v450_v2  ;;  %s480_s22 = scalar_lea.hbm (%p325_p11), %s910_s7, %s576_s17  ;;  %s664_s16 = scalar_lea.hbm (%p325_p11), %s910_s7, 16 }
 0x12c   : >> { %363 = vmatpush.bf16.msra.mxu0 %v580_v33 }
 0x12f   : >> { %570 = vmatmul.msk.bf16.vlgmr.msra.gmra.mxu0 %vm276_vm0, %v316_v31 }
 0x1ac   : >> { %v365_v35 = vpop.f32.mrf.mxu0 }
 0x1ad   : >> { %v366_v36 = vadd.f32 %v639_v34, %v365_v35 }
 0x1af   : >> { %v369_v37 = vpack.c.bf16 %v366_v36, %v366_v36 }
 0x1b1   : >> { %371 = vrot.lane.b32.xlu0 %v369_v37, %s717_s23  ;;  %s482_s23 = sshll.u32 (%p325_p11), %s269_s9, 4  ;;  %s483_s23 = int_to_ptr.vmem [resolvable:$true] %s482_s23 }
 0x1b4   : >> { %v367_v38 = vpop.f32.mrf.mxu0 }
 0x223   : >> { %v372_v39 = vpop.permute.xlu0 %371 }
 0x224   : >> { %v378_v40 = vsel %vm373_vm5, %v372_v39, 0 }
 0x225   : >> { %387 = vmatpush.bf16.xpose.msra.mxu1 %v378_v40 }
 0x22c   : >> { %571 = vmatmul.msk.bf16.vlgmr.msra.gmra.mxu1 %vm373_vm5, %v369_v37 }
 0x2a9   : >> { %v389_v41 = vpop.f32.mrf.mxu1 }
 0x2aa   : >> { %v393_v42 = vmul.f32 0.35355338, %v389_v41 }
 0x2ac   : >> { %v394_v43 = vsel %vm373_vm5, %v393_v42, -inf }
 0x2ad   : >> { %395 = vmax.xlane.f32.xlu0 %v394_v43 }
 0x2b1   : >> { %v391_v44 = vpop.f32.mrf.mxu1 }
 0x320   : >> { %v396_v45 = vpop.xlane.xlu0 %395 }
 0x321   : >> { %v397_v46 = vsub.f32 %v393_v42, %v396_v45 }
 0x323   : >> { %v398_v47 = vmul.f32 1.442695, %v397_v46 }
 0x325   : >> { %640 = vpow2.f32 %v398_v47 }
 0x32b   : >> { %v641_v48 = vpop.eup %640 }
 0x32c   : >> { %v400_v49 = vsel %vm373_vm5, %v641_v48, 0.0 }
 0x32d   : >> { %401 = vadd.xlane.f32.xlu1 %v400_v49 }
 0x346   : >> { %419 = vrot.lane.b32.xlu1 %v369_v37, %s718_s29  ;;  %s484_s29 = sshll.u32 (%p325_p11), %s480_s22, 4  ;;  %s485_s29 = int_to_ptr.hbm [resolvable:$true] %s484_s29 }
 0x347   : > { %s658_s8 = sshra.s32 (%p325_p11), %s485_s29, 4  ;;  %s659_s8 = int_to_ptr.hbm [resolvable:$true] %s658_s8 }
 0x348   : > { %s660_s14 = scalar_lea.hbm (%p325_p11), %s659_s8, 8  ;;  %p665_p1 = scmp.lt.s32.totalorder (%p325_p11), %s659_s8, %s910_s7 }
 0x349   : > { %p661_p12 = scmp.ne.s32.totalorder (%p325_p11), %s659_s8, %s660_s14  ;;  %p666_p2 = scmp.lt.s32.totalorder (%p325_p11), %s664_s16, %s660_s14 }
 0x34b   : > { %p662_p13 = pnand (%p325_p11), %p661_p12, %p797_p5  ;;  %p667_p3 = por (%p325_p11), %p666_p2, %p665_p1 }
 0x34d   : > { %p663_p0 = pneg (%p325_p11), %p662_p13 }
 0x34f   : > { %p668_p4 = pnand (%p325_p11), %p667_p3, %p663_p0 }
 0x3a0   : >> { %v402_v50 = vpop.xlane.xlu1 %401 }
 0x3a1   : >> { %642 = vrcp.f32 %v402_v50  ;;  %v414_v55 = vand.u32 2147483648, %v402_v50  ;;  %vm408_vm7 = vweird.f32 %v402_v50  ;;  %v412_v57 = vand.u32 2147483647, %v402_v50 }
 0x3a3   : >> { %v415_v59 = vor.u32 1.1754944e-38, %v414_v55  ;;  %vm413_vm9 = vcmp.eq.f32.partialorder %v412_v57, 8.507059e+37 }
 0x3a7   : >> { %v643_v51 = vpop.eup %642 }
 0x3a8   : >> { %v404_v52 = vmul.f32 %v643_v51, %v402_v50  ;;  %vm409_vm6 = vweird.f32 %v643_v51 }
 0x3a9   : >> { %vm410_vm8 = vmor %vm408_vm7, %vm409_vm6 }
 0x3aa   : >> { %v405_v53 = vsub.f32 1.0, %v404_v52 }
 0x3ac   : >> { %v406_v54 = vmul.f32 %v643_v51, %v405_v53 }
 0x3ae   : >> { %v407_v56 = vadd.f32 %v643_v51, %v406_v54 }
 0x3b0   : >> { %v411_v58 = vsel %vm410_vm8, %v643_v51, %v407_v56 }
 0x3b1   : >> { %v416_v60 = vsel %vm413_vm9, %v415_v59, %v411_v58 }
 0x3b2   : >> { %v417_v61 = vmul.f32 %v641_v48, %v416_v60 }
 0x3b4   : >> { %v418_v0 = vpack.c.bf16 %v417_v61, %v417_v61 }
 0x3b8   : >> { %v420_v62 = vpop.permute.xlu1 %419 }
 0x3b9   : >> { %v426_v63 = vsel %vm424_vm10, %v420_v62, 0 }
 0x3ba   : >> { %435 = vmatpush.bf16.msra.mxu2 %v426_v63 }
 0x3bd   : >> { %572 = vmatmul.msk.bf16.vlgmr.msra.gmra.mxu2 %vm373_vm5, %v418_v0 }
 0x440   : >> { %v437_v3 = vpop.f32.mrf.mxu2 }
 0x441   : >> { %v442_v4 = vpack.c.bf16 %v437_v3, %v437_v3 }
 0x443   : >> { %574 = vmatmul.msk.bf16.vlgmr.msra.gmra.mxu3 %vm373_vm5, %v442_v4 }
 0x448   : >> { %v439_v5 = vpop.f32.mrf.mxu2 }
 0x4c6   : >> { %v461_v7 = vpop.f32.mrf.mxu3 }
 0x4c7   : >> { %v465_v8 = vadd.f32 %v461_v7, %v441_v6 }
 0x4c9   : >> { %466 = vst.msk [vmem:[#allocation2] sm:$0xff] %vm276_vm0, %v465_v8 }
 0x4ce   : >> { %v463_v9 = vpop.f32.mrf.mxu3  ;;  %327 = sbr.rel (!%p325_p11) target bundleno = 293 (0x125), region = 93 }
 0x4d0   : > { %v467_v10 = vld [vmem:[#allocation2] sm:$0xff] (%p325_p11) }
 0x4d1   : > { %468 = vst.msk [vmem:[%s269_s9] sm:$0xff] (%p325_p11), %vm276_vm0, %v467_v10 }
 0x4d3   : > { %671 = shalt.err (!%p668_p4)
}
 0x4d4   : > { %582 = dma.vmem_to_hbm [thread:$0]  (%p797_p5), %s483_s23, 128, %s485_s29, %s470_s13  }
 0x4d5 PF: > { %p588_p7 = scmp.ge.s32.totalorder %s710_s27, 2  ;;  %s496_s20 = sand.u32 1, %s698_s24  }
 0x4d6   : > { %s497_s21 = scalar_lea.sflag [#allocation4], %s496_s20 }
 0x4d7   : > { %p585_p8 = pnand %p588_p7, %p801_p6 }
 0x4d9   : > { %p586_p9 = pneg %p585_p8 }
 0x4db   : > { %693 = dma.done.wait (%p586_p9), %s497_s21, 128  }
 0x4dc   : > { %695 = vsyncadd (%p586_p9), %s497_s21, 4294967168  ;;  %p17_p10 = scmp.ge.s32.totalorder %s784_s30, 4   ;;  %s913_s24 = smov %s702_s25 }
 0x4dd   : > { %s914_s25 = smov %s706_s26  ;;  %s915_s26 = smov %s795_s10 }
 0x4de   : > { %s916_s27 = smov %s784_s30  ;;  %19 = sbr.rel (!%p17_p10) target bundleno = 3 (0x3), region = 104 }
 0x4e3   :  { %503 = vsyncpa [#allocation4], 1 }
 0x4e4   :  { %505 = vsyncpa [#allocation4 + $0x1], 1 }

</bundles_post_ra>
